<compile_context>
chip_gen: v6e
topology: v6e:2x2x1
jax: 0.10.0
libtpu: 0.0.40
codegen_flags: <defaults>
</compile_context>

<pallas_src>
import functools

import numpy as np
import jax
import jax.numpy as jnp
from jax import lax
from jax.experimental import pallas as pl
from jax.experimental.pallas import tpu as pltpu


def _vmem_capacity_bytes():
  """VMEM capacity of the local TPU; conservative (v7x-sized) fallback."""
  try:
    cap = int(pltpu.get_tpu_info().vmem_capacity_bytes)
    if cap > 0:
      return cap
  except Exception:
    pass
  return 64 * 1024 * 1024


def _pick_channel_block(total, *, cost_per_channel, budget_bytes, align,
                        max_channels=None):
  """Largest divisor of `total` whose per-block VMEM cost fits the budget.

  Prefers `align`-multiple blocks (sublane packing: 8 rows/vreg for f32,
  16 for bf16, 32 for int8) or the full extent so block shapes respect the
  TPU (8, 128) tiling rule; falls back to the largest fitting divisor for
  odd channel counts.
  """
  if max_channels is None:
    max_channels = total
  max_channels = max(1, min(max_channels, total))
  best_any = 1
  best_aligned = None
  for cand in range(1, total + 1):
    if total % cand or cand > max_channels:
      continue
    if cand * cost_per_channel > budget_bytes:
      continue
    best_any = cand
    if cand % align == 0 or cand == total:
      best_aligned = cand
  return best_aligned if best_aligned is not None else best_any


def _spectral_kernel(x_ref, s_ref, o_ref):
  # y = x * (w + 1)   (+1 residual folded on the host; native-dtype multiply,
  # no f32 round trip -> fewer casts and half the vreg traffic for bf16 I/O).
  o_ref[...] = x_ref[...] * s_ref[...]


def _dwconv_kernel(y_alias_ref, x_ref, w_ref, b_ref, m_ref, o_ref, *, W):
  """3x3 depthwise conv (pad=1) + bias + residual on flattened (H*W) lanes.

  Boundary handling uses host-precomputed f32 per-tap validity masks
  (m_ref: (8, HW)) -- one multiply per tap instead of compares/selects.
  """
  del y_alias_ref                      # aliased output buffer; untouched here
  x = x_ref[...].astype(jnp.float32)   # (c_blk, HW)
  w = w_ref[...]                       # (c_blk, 9) f32; center tap has +1
  m = m_ref[...]                       # (8, HW)    f32

  acc = x * w[:, 4:5] + b_ref[...]
  k = 0
  for dy in (-1, 0, 1):
    for dx in (-1, 0, 1):
      if dy == 0 and dx == 0:
        continue
      tap = (dy + 1) * 3 + (dx + 1)
      # shifted[i] = x[i + dy*W + dx]; row/col wrap bleed is killed by the mask.
      shifted = jnp.roll(x, -(dy * W + dx), axis=1)
      acc = acc + (shifted * m[k:k + 1, :]) * w[:, tap:tap + 1]
      k += 1
  o_ref[...] = acc.astype(o_ref.dtype)


def _mew_forward(x, w_hw, w_cw, w_ch, dw_w, dw_b):
  B, C, H, W = x.shape
  assert C % 4 == 0, "Channels must be divisible by 4"
  chunk = C // 4
  n_fft = 3 * chunk
  HW = H * W
  itemsize = jnp.dtype(x.dtype).itemsize

  x_flat = x.reshape(B, C, HW)                   # contiguous reshape (free)

  # --- host-side parameter prep: fold the residual (+x) into the weights ----
  scale1 = (jnp.concatenate(
      [w_hw.reshape(-1), w_cw.reshape(-1), w_ch.reshape(-1)]
  ).astype(jnp.float32) + 1.0).astype(x.dtype).reshape(n_fft, 1)
  taps = dw_w.reshape(chunk, 9).astype(jnp.float32)
  taps = taps.at[:, 4].add(1.0)                  # center tap += 1  (residual)
  bias = dw_b.reshape(chunk, 1).astype(jnp.float32)

  # Per-tap boundary-validity masks for the flattened-lane 3x3 stencil.
  rows = np.repeat(np.arange(H), W)
  cols = np.tile(np.arange(W), H)
  masks_np = []
  for dy in (-1, 0, 1):
    for dx in (-1, 0, 1):
      if dy == 0 and dx == 0:
        continue
      ok = np.ones(HW, np.float64)
      if dy < 0:
        ok = ok * (rows >= 1)
      if dy > 0:
        ok = ok * (rows <= H - 2)
      if dx < 0:
        ok = ok * (cols >= 1)
      if dx > 0:
        ok = ok * (cols <= W - 2)
      masks_np.append(ok.astype(np.float32))
  masks = jnp.asarray(np.stack(masks_np))        # (8, HW) f32

  # --- generation-aware block sizing ----------------------------------------
  vmem_cap = _vmem_capacity_bytes()              # 64 MiB v7x, 128 MiB v5e/v6e
  vmem_limit = min(vmem_cap * 3 // 4, 100 * 1024 * 1024)
  work_budget = int(vmem_limit * 0.70)           # headroom for sems/scratch

  align = max(8, 32 // itemsize)                 # 8 f32, 16 bf16, 32 int8
  # Keep >= 2 parallel grid steps so both v7x TensorCores get work.
  max_c_spec = n_fft if B >= 2 else max(1, n_fft // 2)
  max_c_conv = chunk if B >= 2 else max(1, chunk // 2)

  # Spectral call VMEM per channel row: double-buffered in + out blocks only.
  cost_spec = 4 * HW * itemsize
  cbs = _pick_channel_block(n_fft, cost_per_channel=cost_spec,
                            budget_bytes=work_budget, align=align,
                            max_channels=max_c_spec)
  # Conv call: double-buffered in + out blocks plus ~6 full-size f32 temps
  # live across the unrolled tap loop; the (8, HW) mask block is resident once.
  cost_conv = 4 * HW * itemsize + 6 * HW * 4
  conv_budget = max(cost_conv, work_budget - 2 * 8 * HW * 4)
  cbc = _pick_channel_block(chunk, cost_per_channel=cost_conv,
                            budget_bytes=conv_budget, align=align,
                            max_channels=max_c_conv)
  assert n_fft % cbs == 0 and chunk % cbc == 0 and n_fft % cbc == 0
  conv_off = n_fft // cbc                        # conv chunk offset in blocks
  # Note: for odd channel counts the block may fall back to an unaligned
  # divisor; realistic widths (C % 32 == 0) stay sublane-aligned.

  # --- call 1: spectral channels, pure elementwise per-channel scale --------
  y_partial = pl.pallas_call(
      _spectral_kernel,
      out_shape=jax.ShapeDtypeStruct((B, C, HW), x.dtype),
      grid_spec=pltpu.PrefetchScalarGridSpec(
          num_scalar_prefetch=0,
          grid=(B, n_fft // cbs),
          in_specs=[
              pl.BlockSpec((None, cbs, HW), lambda b, ci: (b, ci, 0)),
              pl.BlockSpec((cbs, 1), lambda b, ci: (ci, 0)),
          ],
          out_specs=pl.BlockSpec((None, cbs, HW), lambda b, ci: (b, ci, 0)),
      ),
      compiler_params=pltpu.CompilerParams(
          dimension_semantics=("parallel", "parallel"),
          vmem_limit_bytes=vmem_limit),
      cost_estimate=pl.CostEstimate(
          flops=B * n_fft * HW, transcendentals=0,
          bytes_accessed=2 * B * n_fft * HW * itemsize),
  )(x_flat, scale1)

  # --- call 2: conv channels, written in place into the same output buffer --
  out_flat = pl.pallas_call(
      functools.partial(_dwconv_kernel, W=W),
      out_shape=jax.ShapeDtypeStruct((B, C, HW), x.dtype),
      grid_spec=pltpu.PrefetchScalarGridSpec(
          num_scalar_prefetch=0,
          grid=(B, chunk // cbc),
          in_specs=[
              pl.BlockSpec(memory_space=pl.ANY),            # aliased out buffer
              pl.BlockSpec((None, cbc, HW),
                           lambda b, ci: (b, conv_off + ci, 0)),
              pl.BlockSpec((cbc, 9), lambda b, ci: (ci, 0)),
              pl.BlockSpec((cbc, 1), lambda b, ci: (ci, 0)),
              pl.BlockSpec((8, HW), lambda b, ci: (0, 0)),
          ],
          out_specs=pl.BlockSpec((None, cbc, HW),
                                 lambda b, ci: (b, conv_off + ci, 0)),
      ),
      input_output_aliases={0: 0},
      compiler_params=pltpu.CompilerParams(
          dimension_semantics=("parallel", "parallel"),
          vmem_limit_bytes=vmem_limit),
      cost_estimate=pl.CostEstimate(
          flops=26 * B * chunk * HW, transcendentals=0,
          bytes_accessed=2 * B * chunk * HW * itemsize),
  )(y_partial, x_flat, taps, bias, masks)

  return out_flat.reshape(B, C, H, W)


mew_forward = jax.jit(_mew_forward)


def mew_reference(x, w_hw, w_cw, w_ch, dw_w, dw_b):
  """Pure-JAX reference matching the PyTorch forward (uses real FFTs)."""
  B, C, H, W = x.shape
  chunk = C // 4
  x1, x2, x3, x4 = jnp.split(x, 4, axis=1)
  y1 = jnp.fft.ifft2(jnp.fft.fft2(x1) * w_hw[None, :, None, None]).real
  y2 = jnp.fft.ifft2(jnp.fft.fft2(x2) * w_cw[None, :, None, None]).real
  y3 = jnp.fft.ifft2(jnp.fft.fft2(x3) * w_ch[None, :, None, None]).real
  y4 = lax.conv_general_dilated(
      x4, dw_w, window_strides=(1, 1), padding=((1, 1), (1, 1)),
      dimension_numbers=("NCHW", "OIHW", "NCHW"),
      feature_group_count=chunk) + dw_b[None, :, None, None]
  return (jnp.concatenate([y1, y2, y3, y4], axis=1) + x).astype(x.dtype)


if __name__ == "__main__":
  key = jax.random.PRNGKey(0)
  B, C, H, W = 2, 32, 16, 16          # chunk = 8 -> sublane-aligned blocks
  chunk = C // 4

  kx, k1, k2, k3, kw, kb = jax.random.split(key, 6)
  x = jax.random.normal(kx, (B, C, H, W), jnp.float32)

  # Module init shapes: (1, chunk, 1, 1) spectral weights -> stored as (chunk,),
  # depthwise conv weight (chunk, 1, 3, 3) and bias (chunk,).
  w_hw = 1.0 + 0.25 * jax.random.normal(k1, (chunk,), jnp.float32)
  w_cw = 1.0 + 0.25 * jax.random.normal(k2, (chunk,), jnp.float32)
  w_ch = 1.0 + 0.25 * jax.random.normal(k3, (chunk,), jnp.float32)
  dw_w = 0.1 * jax.random.normal(kw, (chunk, 1, 3, 3), jnp.float32)
  dw_b = 0.1 * jax.random.normal(kb, (chunk,), jnp.float32)

  out = jax.block_until_ready(mew_forward(x, w_hw, w_cw, w_ch, dw_w, dw_b))
  ref = mew_reference(x, w_hw, w_cw, w_ch, dw_w, dw_b)
  assert out.shape == ref.shape and out.dtype == ref.dtype
  if not jnp.allclose(out, ref, atol=1e-3, rtol=1e-3):
    raise AssertionError("Pallas MEW kernel does not match reference")
  print("KERNEL_OK")
</pallas_src>

<mosaic_0001>
module attributes {stable_mosaic.version = 11 : i64} {
  func.func @_spectral_kernel(%arg0: i32, %arg1: i32, %arg2: memref<1x24x256xf32, #tpu.memory_space<vmem>>, %arg3: memref<24x1xf32, #tpu.memory_space<vmem>>, %arg4: memref<1x24x256xf32, #tpu.memory_space<vmem>>) attributes {dimension_semantics = [#tpu.dimension_semantics<parallel>, #tpu.dimension_semantics<parallel>], iteration_bounds = array<i64: 2, 1>, scalar_prefetch = 0 : i64, scratch_operands = 0 : i64, tpu.core_type = #tpu.core_type<tc>, window_params = [{transform_indices = @transform_0, window_bounds = array<i64: 1, 24, 256>}, {transform_indices = @transform_1, window_bounds = array<i64: 24, 1>}, {transform_indices = @transform_2, window_bounds = array<i64: 1, 24, 256>}]} {
    %c0 = arith.constant 0 : index
    %c0_0 = arith.constant 0 : index
    %c0_1 = arith.constant 0 : index
    %0 = vector.load %arg2[%c0, %c0_0, %c0_1] : memref<1x24x256xf32, #tpu.memory_space<vmem>>, vector<1x24x256xf32>
    %1 = vector.shape_cast %0 : vector<1x24x256xf32> to vector<24x256xf32>
    %c0_2 = arith.constant 0 : index
    %c0_3 = arith.constant 0 : index
    %2 = vector.load %arg3[%c0_2, %c0_3] : memref<24x1xf32, #tpu.memory_space<vmem>>, vector<24x1xf32>
    %3 = vector.broadcast %2 : vector<24x1xf32> to vector<24x256xf32>
    %4 = arith.mulf %1, %3 : vector<24x256xf32>
    %c0_4 = arith.constant 0 : index
    %c0_5 = arith.constant 0 : index
    %c0_6 = arith.constant 0 : index
    %5 = vector.load %arg4[%c0_4, %c0_5, %c0_6] : memref<1x24x256xf32, #tpu.memory_space<vmem>>, vector<1x24x256xf32>
    %6 = vector.shape_cast %5 : vector<1x24x256xf32> to vector<24x256xf32>
    %7 = vector.shape_cast %4 : vector<24x256xf32> to vector<1x24x256xf32>
    tpu.vector_store %arg4[%c0_4, %c0_5, %c0_6], %7 {strides = array<i32>} : memref<1x24x256xf32, #tpu.memory_space<vmem>>, vector<1x24x256xf32>,
    return
  }
  func.func @transform_0(%arg0: i32, %arg1: i32) -> (i32, i32, i32) {
    %c0_i32 = arith.constant 0 : i32
    %c0_i32_0 = arith.constant 0 : i32
    return %arg0, %arg1, %c0_i32 : i32, i32, i32
  }
  func.func @transform_1(%arg0: i32, %arg1: i32) -> (i32, i32) {
    %c0_i32 = arith.constant 0 : i32
    %c0_i32_0 = arith.constant 0 : i32
    return %arg1, %c0_i32 : i32, i32
  }
  func.func @transform_2(%arg0: i32, %arg1: i32) -> (i32, i32, i32) {
    %c0_i32 = arith.constant 0 : i32
    %c0_i32_0 = arith.constant 0 : i32
    return %arg0, %arg1, %c0_i32 : i32, i32, i32
  }
}

module attributes {stable_mosaic.version = 11 : i64} {
  func.func @_dwconv_kernel(%arg0: i32, %arg1: i32, %arg2: memref<2x32x256xf32, #tpu.memory_space<any>>, %arg3: memref<1x8x256xf32, #tpu.memory_space<vmem>>, %arg4: memref<8x9xf32, #tpu.memory_space<vmem>>, %arg5: memref<8x1xf32, #tpu.memory_space<vmem>>, %arg6: memref<8x256xf32, #tpu.memory_space<vmem>>, %arg7: memref<1x8x256xf32, #tpu.memory_space<vmem>>) attributes {dimension_semantics = [#tpu.dimension_semantics<parallel>, #tpu.dimension_semantics<parallel>], iteration_bounds = array<i64: 2, 1>, scalar_prefetch = 0 : i64, scratch_operands = 0 : i64, tpu.core_type = #tpu.core_type<tc>, window_params = [{}, {transform_indices = @transform_1, window_bounds = array<i64: 1, 8, 256>}, {transform_indices = @transform_2, window_bounds = array<i64: 8, 9>}, {transform_indices = @transform_3, window_bounds = array<i64: 8, 1>}, {pipeline_mode = #tpu.pipeline_mode<synchronous>, transform_indices = @transform_4, window_bounds = array<i64: 8, 256>}, {transform_indices = @transform_5, window_bounds = array<i64: 1, 8, 256>}]} {
    %c0 = arith.constant 0 : index
    %c0_0 = arith.constant 0 : index
    %c0_1 = arith.constant 0 : index
    %0 = vector.load %arg3[%c0, %c0_0, %c0_1] : memref<1x8x256xf32, #tpu.memory_space<vmem>>, vector<1x8x256xf32>
    %1 = vector.shape_cast %0 : vector<1x8x256xf32> to vector<8x256xf32>
    %c0_2 = arith.constant 0 : index
    %c0_3 = arith.constant 0 : index
    %2 = vector.load %arg4[%c0_2, %c0_3] : memref<8x9xf32, #tpu.memory_space<vmem>>, vector<8x9xf32>
    %c0_4 = arith.constant 0 : index
    %c0_5 = arith.constant 0 : index
    %3 = vector.load %arg6[%c0_4, %c0_5] : memref<8x256xf32, #tpu.memory_space<vmem>>, vector<8x256xf32>
    %4 = vector.extract_strided_slice %2 {offsets = [0, 4], sizes = [8, 1], strides = [1, 1]} : vector<8x9xf32> to vector<8x1xf32>
    %5 = vector.broadcast %4 : vector<8x1xf32> to vector<8x256xf32>
    %6 = arith.mulf %1, %5 : vector<8x256xf32>
    %c0_6 = arith.constant 0 : index
    %c0_7 = arith.constant 0 : index
    %7 = vector.load %arg5[%c0_6, %c0_7] : memref<8x1xf32, #tpu.memory_space<vmem>>, vector<8x1xf32>
    %8 = vector.broadcast %7 : vector<8x1xf32> to vector<8x256xf32>
    %9 = arith.addf %6, %8 : vector<8x256xf32>
    %10 = vector.extract_strided_slice %1 {offsets = [0, 239], sizes = [8, 17], strides = [1, 1]} : vector<8x256xf32> to vector<8x17xf32>
    %11 = vector.extract_strided_slice %1 {offsets = [0, 0], sizes = [8, 239], strides = [1, 1]} : vector<8x256xf32> to vector<8x239xf32>
    %12 = tpu.concatenate %10, %11 in 1 : vector<8x17xf32>, vector<8x239xf32> -> vector<8x256xf32>
    %13 = vector.extract_strided_slice %3 {offsets = [0, 0], sizes = [1, 256], strides = [1, 1]} : vector<8x256xf32> to vector<1x256xf32>
    %14 = vector.broadcast %13 : vector<1x256xf32> to vector<8x256xf32>
    %15 = arith.mulf %12, %14 : vector<8x256xf32>
    %16 = vector.extract_strided_slice %2 {offsets = [0, 0], sizes = [8, 1], strides = [1, 1]} : vector<8x9xf32> to vector<8x1xf32>
    %17 = vector.broadcast %16 : vector<8x1xf32> to vector<8x256xf32>
    %18 = arith.mulf %15, %17 : vector<8x256xf32>
    %19 = arith.addf %9, %18 : vector<8x256xf32>
    %20 = vector.extract_strided_slice %1 {offsets = [0, 240], sizes = [8, 16], strides = [1, 1]} : vector<8x256xf32> to vector<8x16xf32>
    %21 = vector.extract_strided_slice %1 {offsets = [0, 0], sizes = [8, 240], strides = [1, 1]} : vector<8x256xf32> to vector<8x240xf32>
    %22 = tpu.concatenate %20, %21 in 1 : vector<8x16xf32>, vector<8x240xf32> -> vector<8x256xf32>
    %23 = vector.extract_strided_slice %3 {offsets = [1, 0], sizes = [1, 256], strides = [1, 1]} : vector<8x256xf32> to vector<1x256xf32>
    %24 = vector.broadcast %23 : vector<1x256xf32> to vector<8x256xf32>
    %25 = arith.mulf %22, %24 : vector<8x256xf32>
    %26 = vector.extract_strided_slice %2 {offsets = [0, 1], sizes = [8, 1], strides = [1, 1]} : vector<8x9xf32> to vector<8x1xf32>
    %27 = vector.broadcast %26 : vector<8x1xf32> to vector<8x256xf32>
    %28 = arith.mulf %25, %27 : vector<8x256xf32>
    %29 = arith.addf %19, %28 : vector<8x256xf32>
    %30 = vector.extract_strided_slice %1 {offsets = [0, 241], sizes = [8, 15], strides = [1, 1]} : vector<8x256xf32> to vector<8x15xf32>
    %31 = vector.extract_strided_slice %1 {offsets = [0, 0], sizes = [8, 241], strides = [1, 1]} : vector<8x256xf32> to vector<8x241xf32>
    %32 = tpu.concatenate %30, %31 in 1 : vector<8x15xf32>, vector<8x241xf32> -> vector<8x256xf32>
    %33 = vector.extract_strided_slice %3 {offsets = [2, 0], sizes = [1, 256], strides = [1, 1]} : vector<8x256xf32> to vector<1x256xf32>
    %34 = vector.broadcast %33 : vector<1x256xf32> to vector<8x256xf32>
    %35 = arith.mulf %32, %34 : vector<8x256xf32>
    %36 = vector.extract_strided_slice %2 {offsets = [0, 2], sizes = [8, 1], strides = [1, 1]} : vector<8x9xf32> to vector<8x1xf32>
    %37 = vector.broadcast %36 : vector<8x1xf32> to vector<8x256xf32>
    %38 = arith.mulf %35, %37 : vector<8x256xf32>
    %39 = arith.addf %29, %38 : vector<8x256xf32>
    %40 = vector.extract_strided_slice %1 {offsets = [0, 255], sizes = [8, 1], strides = [1, 1]} : vector<8x256xf32> to vector<8x1xf32>
    %41 = vector.extract_strided_slice %1 {offsets = [0, 0], sizes = [8, 255], strides = [1, 1]} : vector<8x256xf32> to vector<8x255xf32>
    %42 = tpu.concatenate %40, %41 in 1 : vector<8x1xf32>, vector<8x255xf32> -> vector<8x256xf32>
    %43 = vector.extract_strided_slice %3 {offsets = [3, 0], sizes = [1, 256], strides = [1, 1]} : vector<8x256xf32> to vector<1x256xf32>
    %44 = vector.broadcast %43 : vector<1x256xf32> to vector<8x256xf32>
    %45 = arith.mulf %42, %44 : vector<8x256xf32>
    %46 = vector.extract_strided_slice %2 {offsets = [0, 3], sizes = [8, 1], strides = [1, 1]} : vector<8x9xf32> to vector<8x1xf32>
    %47 = vector.broadcast %46 : vector<8x1xf32> to vector<8x256xf32>
    %48 = arith.mulf %45, %47 : vector<8x256xf32>
    %49 = arith.addf %39, %48 : vector<8x256xf32>
    %50 = vector.extract_strided_slice %1 {offsets = [0, 1], sizes = [8, 255], strides = [1, 1]} : vector<8x256xf32> to vector<8x255xf32>
    %51 = vector.extract_strided_slice %1 {offsets = [0, 0], sizes = [8, 1], strides = [1, 1]} : vector<8x256xf32> to vector<8x1xf32>
    %52 = tpu.concatenate %50, %51 in 1 : vector<8x255xf32>, vector<8x1xf32> -> vector<8x256xf32>
    %53 = vector.extract_strided_slice %3 {offsets = [4, 0], sizes = [1, 256], strides = [1, 1]} : vector<8x256xf32> to vector<1x256xf32>
    %54 = vector.broadcast %53 : vector<1x256xf32> to vector<8x256xf32>
    %55 = arith.mulf %52, %54 : vector<8x256xf32>
    %56 = vector.extract_strided_slice %2 {offsets = [0, 5], sizes = [8, 1], strides = [1, 1]} : vector<8x9xf32> to vector<8x1xf32>
    %57 = vector.broadcast %56 : vector<8x1xf32> to vector<8x256xf32>
    %58 = arith.mulf %55, %57 : vector<8x256xf32>
    %59 = arith.addf %49, %58 : vector<8x256xf32>
    %60 = vector.extract_strided_slice %1 {offsets = [0, 15], sizes = [8, 241], strides = [1, 1]} : vector<8x256xf32> to vector<8x241xf32>
    %61 = vector.extract_strided_slice %1 {offsets = [0, 0], sizes = [8, 15], strides = [1, 1]} : vector<8x256xf32> to vector<8x15xf32>
    %62 = tpu.concatenate %60, %61 in 1 : vector<8x241xf32>, vector<8x15xf32> -> vector<8x256xf32>
    %63 = vector.extract_strided_slice %3 {offsets = [5, 0], sizes = [1, 256], strides = [1, 1]} : vector<8x256xf32> to vector<1x256xf32>
    %64 = vector.broadcast %63 : vector<1x256xf32> to vector<8x256xf32>
    %65 = arith.mulf %62, %64 : vector<8x256xf32>
    %66 = vector.extract_strided_slice %2 {offsets = [0, 6], sizes = [8, 1], strides = [1, 1]} : vector<8x9xf32> to vector<8x1xf32>
    %67 = vector.broadcast %66 : vector<8x1xf32> to vector<8x256xf32>
    %68 = arith.mulf %65, %67 : vector<8x256xf32>
    %69 = arith.addf %59, %68 : vector<8x256xf32>
    %70 = vector.extract_strided_slice %1 {offsets = [0, 16], sizes = [8, 240], strides = [1, 1]} : vector<8x256xf32> to vector<8x240xf32>
    %71 = vector.extract_strided_slice %1 {offsets = [0, 0], sizes = [8, 16], strides = [1, 1]} : vector<8x256xf32> to vector<8x16xf32>
    %72 = tpu.concatenate %70, %71 in 1 : vector<8x240xf32>, vector<8x16xf32> -> vector<8x256xf32>
    %73 = vector.extract_strided_slice %3 {offsets = [6, 0], sizes = [1, 256], strides = [1, 1]} : vector<8x256xf32> to vector<1x256xf32>
    %74 = vector.broadcast %73 : vector<1x256xf32> to vector<8x256xf32>
    %75 = arith.mulf %72, %74 : vector<8x256xf32>
    %76 = vector.extract_strided_slice %2 {offsets = [0, 7], sizes = [8, 1], strides = [1, 1]} : vector<8x9xf32> to vector<8x1xf32>
    %77 = vector.broadcast %76 : vector<8x1xf32> to vector<8x256xf32>
    %78 = arith.mulf %75, %77 : vector<8x256xf32>
    %79 = arith.addf %69, %78 : vector<8x256xf32>
    %80 = vector.extract_strided_slice %1 {offsets = [0, 17], sizes = [8, 239], strides = [1, 1]} : vector<8x256xf32> to vector<8x239xf32>
    %81 = vector.extract_strided_slice %1 {offsets = [0, 0], sizes = [8, 17], strides = [1, 1]} : vector<8x256xf32> to vector<8x17xf32>
    %82 = tpu.concatenate %80, %81 in 1 : vector<8x239xf32>, vector<8x17xf32> -> vector<8x256xf32>
    %83 = vector.extract_strided_slice %3 {offsets = [7, 0], sizes = [1, 256], strides = [1, 1]} : vector<8x256xf32> to vector<1x256xf32>
    %84 = vector.broadcast %83 : vector<1x256xf32> to vector<8x256xf32>
    %85 = arith.mulf %82, %84 : vector<8x256xf32>
    %86 = vector.extract_strided_slice %2 {offsets = [0, 8], sizes = [8, 1], strides = [1, 1]} : vector<8x9xf32> to vector<8x1xf32>
    %87 = vector.broadcast %86 : vector<8x1xf32> to vector<8x256xf32>
    %88 = arith.mulf %85, %87 : vector<8x256xf32>
    %89 = arith.addf %79, %88 : vector<8x256xf32>
    %c0_8 = arith.constant 0 : index
    %c0_9 = arith.constant 0 : index
    %c0_10 = arith.constant 0 : index
    %90 = vector.load %arg7[%c0_8, %c0_9, %c0_10] : memref<1x8x256xf32, #tpu.memory_space<vmem>>, vector<1x8x256xf32>
    %91 = vector.shape_cast %90 : vector<1x8x256xf32> to vector<8x256xf32>
    %92 = vector.shape_cast %89 : vector<8x256xf32> to vector<1x8x256xf32>
    tpu.vector_store %arg7[%c0_8, %c0_9, %c0_10], %92 {strides = array<i32>} : memref<1x8x256xf32, #tpu.memory_space<vmem>>, vector<1x8x256xf32>,
    return
  }
  func.func @transform_1(%arg0: i32, %arg1: i32) -> (i32, i32, i32) {
    %c3_i32 = arith.constant 3 : i32
    %0 = arith.addi %c3_i32, %arg1 : i32
    %c0_i32 = arith.constant 0 : i32
    %c0_i32_0 = arith.constant 0 : i32
    return %arg0, %0, %c0_i32 : i32, i32, i32
  }
  func.func @transform_2(%arg0: i32, %arg1: i32) -> (i32, i32) {
    %c0_i32 = arith.constant 0 : i32
    %c0_i32_0 = arith.constant 0 : i32
    return %arg1, %c0_i32 : i32, i32
  }
  func.func @transform_3(%arg0: i32, %arg1: i32) -> (i32, i32) {
    %c0_i32 = arith.constant 0 : i32
    %c0_i32_0 = arith.constant 0 : i32
    return %arg1, %c0_i32 : i32, i32
  }
  func.func @transform_4(%arg0: i32, %arg1: i32) -> (i32, i32) {
    %c0_i32 = arith.constant 0 : i32
    %c0_i32_0 = arith.constant 0 : i32
    %c0_i32_1 = arith.constant 0 : i32
    return %c0_i32, %c0_i32_0 : i32, i32
  }
  func.func @transform_5(%arg0: i32, %arg1: i32) -> (i32, i32, i32) {
    %c3_i32 = arith.constant 3 : i32
    %0 = arith.addi %c3_i32, %arg1 : i32
    %c0_i32 = arith.constant 0 : i32
    %c0_i32_0 = arith.constant 0 : i32
    return %arg0, %0, %c0_i32 : i32, i32, i32
  }
}

</mosaic_0001>

<bundles_post_ra>
// kernel: _mew_forward.3
= control target key start
LH: loop header
LB: loop body
LE: loop exit
PB: predicated region body
PF: predicated region fallthrough
CT: control target
= control target key end

     0   :  { %s796_s18 = smov 0   ;;  %s798_s19 = smov 0   ;;  %s909_s0 = inlined_call_operand.vmem [shape: f32[2,32,256], index: 0, kind: input, shape index: {}, may-alias: {0,5}]   ;;  %s910_s1 = inlined_call_operand.vmem [shape: f32[2,32,256], index: 1, kind: input, shape index: {}]   ;;  %s911_s2 = inlined_call_operand.vmem [shape: f32[8,9], index: 2, kind: input, shape index: {}]   ;;  %s912_s3 = inlined_call_operand.vmem [shape: f32[8,1], index: 3, kind: input, shape index: {}]   ;;  %s913_s4 = inlined_call_operand.vmem [shape: f32[8,256], index: 4, kind: input, shape index: {}]   ;;  %s914_s5 = inlined_call_operand.vmem [shape: f32[2,32,256], index: 5, kind: output, shape index: {}, may-alias: {0,5}]  }
   0x1   :  { %s800_s0 = smov 0  }
   0x2 LB: > { %s27_s20 = sadd.s32 1, %s743_s19  ;;  %p661_p0 = scmp.ge.s32.totalorder %s747_s0, 1  ;;  %s747_s0 = sphi %s800_s0, %s15_s0   ;;  %s743_s19 = sphi %s798_s19, %s916_s19   ;;  %s739_s18 = sphi %s796_s18, %s915_s18  }
   0x3   : > { %p29_p1 = scmp.ge.s32.totalorder %s27_s20, 2  ;;  %p207_p2 = scmp.lt.s32.totalorder %s747_s0, 3 }
   0x5   : > { %s918_s20 = smov (%p29_p1, %s27_s20), 0  ;;  %p208_p3 = pnand %p661_p0, %p207_p2 }
   0x6   : > { %p252_p4 = scmp.lt.s32.totalorder (!%p208_p3), %s739_s18, 1  ;;  %s751_s30 = smov (!%p208_p3), 17  }
   0x7   : > { %211 = sbr.rel (%p208_p3) target bundleno = 210 (0xd2), region = 36  ;;  %s753_s6 = smov (!%p208_p3), 16  }
   0x8   : > { %s756_s7 = smov (!%p208_p3), 15   ;;  %s759_s8 = smov (!%p208_p3), 1  }
   0x9   : > { %s761_s9 = smov (!%p208_p3), 127   ;;  %s763_s10 = smov (!%p208_p3), 113  }
   0xa   : > { %s764_s11 = smov (!%p208_p3), 112   ;;  %s765_s12 = smov (!%p208_p3), 111  }
   0xc   : > { %v283_v0 = vld [vmem:[%s911_s2] sm:$0xff]  ;;  %v749_v1 = vmov 0   ;;  %v750_v2 = vmov 4   ;;  %s920_s18 = smov (!%p252_p4, %s739_s18), 1  ;;  %v752_v6 = vmov 1   ;;  %v754_v7 = vmov 2  }
   0xd   : > { %717 = vset.pattern.permute.xlu1 %v749_v1  ;;  %715 = vset.pattern.permute.xlu0 %v750_v2  ;;  %v293_v3 = vld [vmem:[%s912_s3] sm:$0xff]  ;;  %s672_s25 = sshll.u32 %s920_s18, 6  ;;  %v755_v8 = vmov 3   ;;  %v757_v9 = vmov 5   ;;  %v758_v10 = vmov 6   ;;  %v760_v11 = vmov 7  }
   0xe   : > { %324 = vperm.xlu1 %717, %v283_v0   ;;  %288 = vperm.xlu0 %715, %v283_v0   ;;  %s820_s26 = sadd.s32 48, %s672_s25  ;;  %v762_v12 = vmov 8   ;;  %v313_v21 = vlaneseq  ;;  %v852_v28 = vld [vmem:[%s913_s4] sm:$0xff]  ;;  %v857_v29 = vld [vmem:[%s913_s4 + $0x8] sm:$0xff]  ;;  %vm308_vm0 = vcmask 138240   ;;  %vm336_vm1 = vcmask 130048  }
   0xf   : > { %s260_s29 = scalar_lea.vmem %s910_s1, %s820_s26  ;;  %vm364_vm2 = vcmask 121856   ;;  %vm392_vm3 = vcmask 7168   ;;  %vm419_vm4 = vcmask 1039360   ;;  %vm447_vm5 = vcmask 924672   ;;  %s279_s21 = scalar_lea.vmem %s914_s5, %s820_s26 }
  0x10   : > { %v826_v4 = vld [vmem:[%s260_s29 + $0x8] sm:$0xff]  ;;  %v829_v5 = vld [vmem:[%s260_s29] sm:$0xff]  ;;  %v846_v24 = vshrl.u32 %v313_v21, 7  ;;  %vm475_vm6 = vcmask 916480   ;;  %vm503_vm7 = vcmask 908288  }
  0x12   : > { %716 = vset.pattern.permute.xlu0 %v749_v1  ;;  %302 = vrot.lane.b32.xlu1 %v826_v4, %s751_s30  ;;  %v315_v27 = vsub.s32 0, %v846_v24  ;;  %v343_v30 = vsub.s32 1, %v846_v24  ;;  %v371_v31 = vsub.s32 2, %v846_v24  ;;  %v399_v38 = vsub.s32 3, %v846_v24 }
  0x13   : > { %296 = vperm.xlu0 %716, %v293_v3   ;;  %v427_v39 = vsub.s32 4, %v846_v24  ;;  %v455_v57 = vsub.s32 5, %v846_v24  ;;  %v483_v59 = vsub.s32 6, %v846_v24 }
  0x14   : > { %v316_v34 = vrot.slane %v852_v28, %v315_v27  ;;  %v320_v35 = vrot.slane %v857_v29, %v315_v27  ;;  %v344_v40 = vrot.slane %v852_v28, %v343_v30  ;;  %v348_v41 = vrot.slane %v857_v29, %v343_v30 }
  0x15   : > { %v372_v42 = vrot.slane %v852_v28, %v371_v31  ;;  %v376_v46 = vrot.slane %v857_v29, %v371_v31  ;;  %v400_v52 = vrot.slane %v852_v28, %v399_v38  ;;  %v404_v53 = vrot.slane %v857_v29, %v399_v38 }
  0x16   : > { %306 = vrot.lane.b32.xlu1 %v829_v5, %s751_s30  ;;  %v428_v54 = vrot.slane %v852_v28, %v427_v39  ;;  %v432_v63 = vrot.slane %v857_v29, %v427_v39  ;;  %v488_v31 = vrot.slane %v857_v29, %v483_v59 }
  0x17   : > { %718 = vset.pattern.permute.xlu0 %v752_v6 }
  0x18   : > { %352 = vperm.xlu0 %718, %v283_v0  }
  0x1a   : > { %331 = vrot.lane.b32.xlu1 %v826_v4, %s753_s6 }
  0x1c   : > { %719 = vset.pattern.permute.xlu0 %v754_v7 }
  0x1d   : > { %380 = vperm.xlu0 %719, %v283_v0  }
  0x1e   : > { %334 = vrot.lane.b32.xlu1 %v829_v5, %s753_s6 }
  0x21   : > { %720 = vset.pattern.permute.xlu0 %v755_v8  ;;  %v456_v8 = vrot.slane %v852_v28, %v455_v57 }
  0x22   : > { %408 = vperm.xlu0 %720, %v283_v0   ;;  %359 = vrot.lane.b32.xlu1 %v826_v4, %s756_s7 }
  0x26   : > { %721 = vset.pattern.permute.xlu0 %v757_v9  ;;  %362 = vrot.lane.b32.xlu1 %v829_v5, %s756_s7  ;;  %v460_v9 = vrot.slane %v857_v29, %v455_v57 }
  0x27   : > { %436 = vperm.xlu0 %721, %v283_v0  }
  0x2a   : > { %387 = vrot.lane.b32.xlu1 %v826_v4, %s759_s8 }
  0x2b   : > { %722 = vset.pattern.permute.xlu0 %v758_v10 }
  0x2c   : > { %464 = vperm.xlu0 %722, %v283_v0  }
  0x2e   : > { %390 = vrot.lane.b32.xlu1 %v829_v5, %s759_s8 }
  0x30   : > { %723 = vset.pattern.permute.xlu0 %v760_v11  ;;  %v484_v11 = vrot.slane %v852_v28, %v483_v59 }
  0x31   : > { %492 = vperm.xlu0 %723, %v283_v0  }
  0x32   : > { %415 = vrot.lane.b32.xlu1 %v829_v5, %s761_s9 }
  0x35   : > { %724 = vset.pattern.permute.xlu0 %v762_v12 }
  0x36   : > { %520 = vperm.xlu0 %724, %v283_v0   ;;  %417 = vrot.lane.b32.xlu1 %v826_v4, %s761_s9 }
  0x3a   : > { %443 = vrot.lane.b32.xlu1 %v829_v5, %s763_s10 }
  0x3e   : > { %445 = vrot.lane.b32.xlu1 %v826_v4, %s763_s10 }
  0x42   : > { %471 = vrot.lane.b32.xlu1 %v829_v5, %s764_s11 }
  0x46   : > { %473 = vrot.lane.b32.xlu1 %v826_v4, %s764_s11 }
  0x4a   : > { %499 = vrot.lane.b32.xlu1 %v829_v5, %s765_s12 }
  0x4e   : > { %501 = vrot.lane.b32.xlu1 %v826_v4, %s765_s12 }
  0x89   : > { %v325_v13 = vpop.permute.xlu1 %324  ;;  %v289_v22 = vpop.permute.xlu0 %288 }
  0x8a   : > { %v291_v44 = vmul.f32 %v289_v22, %v829_v5  ;;  %v292_v45 = vmul.f32 %v289_v22, %v826_v4 }
  0x8d   : > { %v303_v14 = vpop.permute.xlu1 %302 }
  0x8e   : > { %v297_v26 = vpop.permute.xlu0 %296 }
  0x8f   : > { %v299_v2 = vadd.f32 %v297_v26, %v291_v44  ;;  %v300_v3 = vadd.f32 %v297_v26, %v292_v45 }
  0x91   : > { %v307_v15 = vpop.permute.xlu1 %306 }
  0x92   : > { %v309_v36 = vsel %vm308_vm0, %v307_v15, %v303_v14  ;;  %v312_v37 = vsel %vm308_vm0, %v303_v14, %v307_v15 }
  0x93   : > { %v353_v33 = vpop.permute.xlu0 %352  ;;  %v321_v48 = vmul.f32 %v316_v34, %v312_v37  ;;  %v322_v49 = vmul.f32 %v320_v35, %v309_v36  ;;  %v511_v34 = vsub.s32 7, %v846_v24 }
  0x95   : > { %v332_v16 = vpop.permute.xlu1 %331  ;;  %v327_v0 = vmul.f32 %v325_v13, %v321_v48  ;;  %v328_v1 = vmul.f32 %v325_v13, %v322_v49  ;;  %v512_v24 = vrot.slane %v852_v28, %v511_v34 }
  0x98   : > { %v381_v47 = vpop.permute.xlu0 %380 }
  0x99   : > { %v335_v17 = vpop.permute.xlu1 %334 }
  0x9a   : > { %v337_v50 = vsel %vm336_vm1, %v335_v17, %v332_v16  ;;  %v340_v51 = vsel %vm336_vm1, %v332_v16, %v335_v17  ;;  %v329_v17 = vadd.f32 %v327_v0, %v299_v2 }
  0x9b   : > { %v349_v60 = vmul.f32 %v344_v40, %v340_v51  ;;  %v350_v61 = vmul.f32 %v348_v41, %v337_v50  ;;  %v516_v50 = vrot.slane %v857_v29, %v511_v34 }
  0x9d   : > { %v360_v18 = vpop.permute.xlu1 %359  ;;  %v409_v62 = vpop.permute.xlu0 %408  ;;  %v355_v12 = vmul.f32 %v353_v33, %v349_v60  ;;  %v356_v14 = vmul.f32 %v353_v33, %v350_v61 }
  0x9f   : > { %v357_v35 = vadd.f32 %v355_v12, %v329_v17 }
  0xa1   : > { %v363_v19 = vpop.permute.xlu1 %362 }
  0xa2   : > { %v365_v55 = vsel %vm364_vm2, %v363_v19, %v360_v18  ;;  %v368_v56 = vsel %vm364_vm2, %v360_v18, %v363_v19  ;;  %v437_v16 = vpop.permute.xlu0 %436  ;;  %v330_v18 = vadd.f32 %v328_v1, %v300_v3 }
  0xa3   : > { %v377_v4 = vmul.f32 %v372_v42, %v368_v56  ;;  %v378_v5 = vmul.f32 %v376_v46, %v365_v55 }
  0xa5   : > { %v388_v20 = vpop.permute.xlu1 %387  ;;  %v384_v22 = vmul.f32 %v381_v47, %v378_v5 }
  0xa9   : > { %v391_v23 = vpop.permute.xlu1 %390 }
  0xaa   : > { %v393_v6 = vsel %vm392_vm3, %v391_v23, %v388_v20  ;;  %v396_v7 = vsel %vm392_vm3, %v388_v20, %v391_v23  ;;  %v383_v20 = vmul.f32 %v381_v47, %v377_v4 }
  0xab   : > { %v405_v19 = vmul.f32 %v400_v52, %v396_v7  ;;  %v406_v21 = vmul.f32 %v404_v53, %v393_v6 }
  0xac   : > { %v385_v42 = vadd.f32 %v383_v20, %v357_v35 }
  0xad   : > { %v416_v25 = vpop.permute.xlu1 %415  ;;  %v411_v38 = vmul.f32 %v409_v62, %v405_v19  ;;  %v412_v39 = vmul.f32 %v409_v62, %v406_v21 }
  0xaf   : > { %v413_v51 = vadd.f32 %v411_v38, %v385_v42 }
  0xb1   : > { %v418_v32 = vpop.permute.xlu1 %417 }
  0xb2   : > { %v420_v13 = vsel %vm419_vm4, %v416_v25, %v418_v32  ;;  %v424_v15 = vsel %vm419_vm4, %v418_v32, %v416_v25  ;;  %v358_v25 = vadd.f32 %v356_v14, %v330_v18  ;;  %v465_v32 = vpop.permute.xlu0 %464 }
  0xb3   : > { %v433_v27 = vmul.f32 %v428_v54, %v420_v13  ;;  %v434_v30 = vmul.f32 %v432_v63, %v424_v15 }
  0xb5   : > { %v444_v43 = vpop.permute.xlu1 %443  ;;  %v439_v44 = vmul.f32 %v437_v16, %v433_v27  ;;  %v440_v45 = vmul.f32 %v437_v16, %v434_v30 }
  0xb6   : > { %v493_v49 = vpop.permute.xlu0 %492 }
  0xb7   : > { %v441_v55 = vadd.f32 %v439_v44, %v413_v51 }
  0xb9   : > { %v446_v58 = vpop.permute.xlu1 %445 }
  0xba   : > { %v448_v23 = vsel %vm447_vm5, %v444_v43, %v446_v58  ;;  %v452_v26 = vsel %vm447_vm5, %v446_v58, %v444_v43  ;;  %v386_v43 = vadd.f32 %v384_v22, %v358_v25  ;;  %v521_v62 = vpop.permute.xlu0 %520 }
  0xbb   : > { %v461_v40 = vmul.f32 %v456_v8, %v448_v23  ;;  %v462_v41 = vmul.f32 %v460_v9, %v452_v26 }
  0xbc   : > { %v414_v52 = vadd.f32 %v412_v39, %v386_v43 }
  0xbd   : > { %v472_v10 = vpop.permute.xlu1 %471  ;;  %v467_v53 = vmul.f32 %v465_v32, %v461_v40  ;;  %v468_v54 = vmul.f32 %v465_v32, %v462_v41 }
  0xbe   : > { %v442_v56 = vadd.f32 %v440_v45, %v414_v52 }
  0xbf   : > { %v469_v63 = vadd.f32 %v467_v53, %v441_v55 }
  0xc0   : > { %v470_v0 = vadd.f32 %v468_v54, %v442_v56 }
  0xc1   : > { %v474_v33 = vpop.permute.xlu1 %473 }
  0xc2   : > { %v476_v36 = vsel %vm475_vm6, %v472_v10, %v474_v33  ;;  %v480_v37 = vsel %vm475_vm6, %v474_v33, %v472_v10 }
  0xc3   : > { %v489_v46 = vmul.f32 %v484_v11, %v476_v36  ;;  %v490_v47 = vmul.f32 %v488_v31, %v480_v37 }
  0xc5   : > { %v500_v48 = vpop.permute.xlu1 %499  ;;  %v495_v57 = vmul.f32 %v493_v49, %v489_v46  ;;  %v496_v58 = vmul.f32 %v493_v49, %v490_v47 }
  0xc7   : > { %v497_v28 = vadd.f32 %v495_v57, %v469_v63  ;;  %v498_v3 = vadd.f32 %v496_v58, %v470_v0 }
  0xc9   : > { %v502_v59 = vpop.permute.xlu1 %501 }
  0xca   : > { %v504_v60 = vsel %vm503_vm7, %v500_v48, %v502_v59  ;;  %v508_v61 = vsel %vm503_vm7, %v502_v59, %v500_v48 }
  0xcb   : > { %v517_v1 = vmul.f32 %v512_v24, %v504_v60  ;;  %v518_v2 = vmul.f32 %v516_v50, %v508_v61 }
  0xcd   : > { %v523_v29 = vmul.f32 %v521_v62, %v517_v1  ;;  %v524_v4 = vmul.f32 %v521_v62, %v518_v2 }
  0xcf   : > { %v525_v5 = vadd.f32 %v523_v29, %v497_v28  ;;  %v526_v6 = vadd.f32 %v524_v4, %v498_v3 }
  0xd1   : > { %527 = vst [vmem:[%s279_s21] sm:$0xff] %v525_v5  ;;  %528 = vst [vmem:[%s279_s21 + $0x8] sm:$0xff] %v526_v6 }
  0xd2 PF: > { %s15_s0 = sadd.s32 1, %s747_s0   ;;  %s915_s18 = smov %s743_s19 }
  0xd3   : > { %p12_p5 = scmp.ge.s32.totalorder %s15_s0, 4   ;;  %s916_s19 = smov %s918_s20 }
  0xd5   :  { %14 = sbr.rel (!%p12_p5) target bundleno = 2 (0x2), region = 72 }

// kernel: _mew_forward.2
= control target key start
LH: loop header
LB: loop body
LE: loop exit
PB: predicated region body
PF: predicated region fallthrough
CT: control target
= control target key end

     0   :  { %s638_s9 = smov 0   ;;  %s640_s10 = smov 0   ;;  %s731_s0 = inlined_call_operand.vmem [shape: f32[2,32,256], index: 0, kind: input, shape index: {}]   ;;  %s732_s1 = inlined_call_operand.vmem [shape: f32[24,1], index: 1, kind: input, shape index: {}]   ;;  %s733_s2 = inlined_call_operand.vmem [shape: f32[2,32,256], index: 2, kind: output, shape index: {}]  }
   0x1   :  { %s642_s11 = smov 0   ;;  %s644_s12 = smov 0  }
   0x2   :  { %s646_s13 = smov 0  }
   0x3 LB: > { %s466_s14 = sadd.s32 4294967295, %s616_s13   ;;  %s24_s15 = sadd.s32 1, %s612_s12  ;;  %s616_s13 = sphi %s646_s13, %s12_s13   ;;  %s612_s12 = sphi %s644_s12, %s738_s12   ;;  %s608_s11 = sphi %s642_s11, %s737_s11   ;;  %s604_s10 = sphi %s640_s10, %s736_s10   ;;  %s600_s9 = sphi %s638_s9, %s735_s9  }
   0x4   : > { %p26_p0 = scmp.ge.s32.totalorder %s24_s15, 2  ;;  %s87_s16 = sadd.s32 1, %s604_s10 }
   0x5   : > { %p97_p1 = scmp.ne.s32.totalorder %s604_s10, %s600_s9  ;;  %p98_p2 = scmp.eq.s32.totalorder %s466_s14, 1 }
   0x6   : > { %s740_s15 = smov (%p26_p0, %s24_s15), 0  ;;  %p471_p4 = scmp.ge.s32.totalorder %s616_s13, 1 }
   0x7   : > { %p670_p3 = por %p98_p2, %p97_p1  ;;  %s82_s18 = ssub.s32 %s612_s12, %s740_s15 }
   0x8   : > { %p155_p5 = scmp.lt.s32.totalorder %s616_s13, 3  ;;  %p85_p6 = scmp.eq.s32.totalorder %s82_s18, 0 }
   0xa   : > { %p156_p7 = pnand %p471_p4, %p155_p5 }
   0xb   : > { %s679_s19 = scalar_select %p85_p6, %s604_s10, %s87_s16  }
   0xc   : > { %159 = sbr.rel (%p156_p7) target bundleno = 158 (0x9e), region = 28  ;;  %p197_p8 = scmp.lt.s32.totalorder (!%p156_p7), %s608_s11, 1 }
   0xd   : > { %s188_s28 = sand.u32 (!%p156_p7), 1, %s600_s9  }
   0xe   : > { %s486_s4 = smul.u32 (!%p156_p7), 48, %s188_s28 }
  0x10   : > { %s696_s5 = scalar_lea.vmem (!%p156_p7), [#allocation2], %s486_s4  }
  0x11   : > { %v230_v0 = vld [vmem:[%s732_s1] sm:$0xff]  ;;  %v232_v1 = vld [vmem:[%s732_s1 + $0x10] sm:$0xff]  ;;  %v622_v2 = vmov 0   ;;  %v231_v3 = vld [vmem:[%s732_s1 + $0x8] sm:$0xff]  ;;  %s198_s26 = scalar_select %p197_p8, %s608_s11, 1 }
  0x12   : > { %560 = vset.pattern.permute.xlu0 %v622_v2  ;;  %561 = vset.pattern.permute.xlu1 %v622_v2  ;;  %s485_s6 = sshll.u32 (%p670_p3), %s608_s11, 6  ;;  %s618_s14 = smov (%p670_p3), 0  }
  0x13   : > { %235 = vperm.xlu0 %560, %v230_v0   ;;  %245 = vperm.xlu1 %561, %v232_v1   ;;  %s484_s27 = sshll.u32 %s198_s26, 6  ;;  %s278_s9 = scalar_lea.vmem (%p670_p3), %s733_s2, %s485_s6  }
  0x14   : > { %s205_s3 = scalar_lea.vmem %s731_s0, %s484_s27 }
  0x15   : > { %v224_v4 = vld [vmem:[%s205_s3] sm:$0xff]  ;;  %v225_v5 = vld [vmem:[%s205_s3 + $0x8] sm:$0xff]  ;;  %v226_v14 = vld [vmem:[%s205_s3 + $0x10] sm:$0xff] }
  0x16   : > { %v228_v6 = vld [vmem:[%s205_s3 + $0x20] sm:$0xff]  ;;  %v229_v7 = vld [vmem:[%s205_s3 + $0x28] sm:$0xff]  ;;  %v227_v15 = vld [vmem:[%s205_s3 + $0x18] sm:$0xff] }
  0x17   : > { %240 = vperm.xlu0 %560, %v231_v3  }
  0x8e   : > { %v236_v8 = vpop.permute.xlu0 %235  ;;  %v246_v9 = vpop.permute.xlu1 %245 }
  0x8f   : > { %v248_v10 = vmul.f32 %v236_v8, %v224_v4  ;;  %v249_v11 = vmul.f32 %v236_v8, %v225_v5  ;;  %v252_v12 = vmul.f32 %v246_v9, %v228_v6  ;;  %v253_v13 = vmul.f32 %v246_v9, %v229_v7 }
  0x91   : > { %254 = vst [vmem:[%s696_s5] sm:$0xff] %v248_v10  ;;  %255 = vst [vmem:[%s696_s5 + $0x8] sm:$0xff] %v249_v11  ;;  %266 = sbr.rel (!%p670_p3) target bundleno = 158 (0x9e), region = 32 }
  0x92   : > { %258 = vst [vmem:[%s696_s5 + $0x20] sm:$0xff] %v252_v12  ;;  %259 = vst [vmem:[%s696_s5 + $0x28] sm:$0xff] %v253_v13  ;;  %v241_v16 = vpop.permute.xlu0 %240 }
  0x93   : > { %v250_v17 = vmul.f32 %v241_v16, %v226_v14  ;;  %v251_v18 = vmul.f32 %v241_v16, %v227_v15 }
  0x95   : > { %256 = vst [vmem:[%s696_s5 + $0x10] sm:$0xff] %v250_v17  ;;  %257 = vst [vmem:[%s696_s5 + $0x18] sm:$0xff] %v251_v18 }
  0x96 LB: >> { %s289_s14 = sadd.s32 1, %s620_s14   ;;  %s620_s14 = sphi %s618_s14, %s289_s14  }
  0x97   : >> { %p288_p9 = scmp.ge.s32.totalorder %s289_s14, 1 }
  0x98   : >> { %v295_v19 = vld [vmem:[%s696_s5] sm:$0xff]  ;;  %v301_v22 = vld [vmem:[%s696_s5 + $0x8] sm:$0xff] }
  0x99   : >> { %v299_v21 = vld [vmem:[%s696_s5 + $0x20] sm:$0xff]  ;;  %296 = vst [vmem:[%s278_s9] sm:$0xff] %v295_v19  ;;  %v305_v24 = vld [vmem:[%s696_s5 + $0x28] sm:$0xff]  ;;  %302 = vst [vmem:[%s278_s9 + $0x8] sm:$0xff] %v301_v22  ;;  %291 = sbr.rel (!%p288_p9) target bundleno = 150 (0x96), region = 93 }
  0x9a   : >> { %300 = vst [vmem:[%s278_s9 + $0x20] sm:$0xff] %v299_v21  ;;  %306 = vst [vmem:[%s278_s9 + $0x28] sm:$0xff] %v305_v24 }
  0x9c   : >> { %v297_v20 = vld [vmem:[%s696_s5 + $0x10] sm:$0xff]  ;;  %v303_v23 = vld [vmem:[%s696_s5 + $0x18] sm:$0xff] }
  0x9d   : >> { %298 = vst [vmem:[%s278_s9 + $0x10] sm:$0xff] %v297_v20  ;;  %304 = vst [vmem:[%s278_s9 + $0x18] sm:$0xff] %v303_v23 }
  0x9e PF: > { %s12_s13 = sadd.s32 1, %s616_s13   ;;  %s735_s9 = smov %s604_s10 }
  0x9f   : > { %p9_p10 = scmp.ge.s32.totalorder %s12_s13, 4   ;;  %s736_s10 = smov %s679_s19 }
  0xa0   : > { %s737_s11 = smov %s612_s12  ;;  %s738_s12 = smov %s740_s15 }
  0xa1   :  { %11 = sbr.rel (!%p9_p10) target bundleno = 3 (0x3), region = 115 }

</bundles_post_ra>
